<compile_context>
chip_gen: v7x
topology: tpu7x:2x2x1
jax: 0.10.0
libtpu: 0.0.40
codegen_flags: <defaults>
</compile_context>

<pallas_src>
import jax
import jax.numpy as jnp
from jax.experimental import pallas as pl
from jax.experimental.pallas import tpu as pltpu


def _make_lstm_kernel(H: int, O: int, fc_on_vpu: bool):
    """Build the Pallas kernel body (H, O, fc path are static)."""

    def kernel(xw_ref, w_hh_ref, w_fc_ref, b_fc_ref, out_ref):
        # xw_ref:   (T, Bp, 4H)  precomputed x @ W_ih^T + (b_ih + b_hh), gates [i,f,o,g]
        # w_hh_ref: (H, 4H)      W_hh^T with gate columns [i,f,o,g]
        # w_fc_ref: (1, H) if fc_on_vpu else (H, O)
        # b_fc_ref: (1, O)
        # out_ref:  (Bp, O)
        T, Bp, _ = xw_ref.shape
        w_hh = w_hh_ref[...]

        def step(t, carry):
            h, c = carry
            # Only the recurrent matmul remains on the serial per-step path.
            gates = xw_ref[t] + jnp.dot(h, w_hh, preferred_element_type=jnp.float32)
            # Gate order [i, f, o, g]: one sigmoid over 3H lanes, one tanh over H lanes.
            sig = jax.nn.sigmoid(gates[:, : 3 * H])
            i_g = sig[:, 0:H]
            f_g = sig[:, H:2 * H]
            o_g = sig[:, 2 * H:3 * H]
            g_g = jnp.tanh(gates[:, 3 * H:])
            c_new = f_g * c + i_g * g_g
            h_new = o_g * jnp.tanh(c_new)
            return (h_new, c_new)

        h0 = jnp.zeros((Bp, H), jnp.float32)
        c0 = jnp.zeros((Bp, H), jnp.float32)
        # T is small and static -> full unroll gives the scheduler cross-iteration
        # visibility (overlap xw[t+1] loads with the current step's MXU/EUP latency).
        h_last, _ = jax.lax.fori_loop(0, T, step, (h0, c0), unroll=True)

        if fc_on_vpu:
            # O == 1: VPU multiply + lane reduce; avoids a 1-column MXU matmul.
            out_ref[...] = (
                jnp.sum(h_last * w_fc_ref[...], axis=-1, keepdims=True) + b_fc_ref[...]
            )
        else:
            out_ref[...] = (
                jnp.dot(h_last, w_fc_ref[...], preferred_element_type=jnp.float32)
                + b_fc_ref[...]
            )

    return kernel


def prepare_params(params):
    """One-time parameter prep (gate reorder, transposes, bias combine).

    PyTorch layout in:
      w_ih (4H, I), w_hh (4H, H), b_ih (4H,), b_hh (4H,)  with gate order [i, f, g, o]
      w_fc (O, H), b_fc (O,)
    """
    w_ih, w_hh, b_ih, b_hh, w_fc, b_fc = (
        params["w_ih"], params["w_hh"], params["b_ih"],
        params["b_hh"], params["w_fc"], params["b_fc"],
    )
    H = int(w_hh.shape[1])
    O = int(w_fc.shape[0])
    # Reorder gates [i, f, g, o] -> [i, f, o, g] so sigmoid gates are contiguous.
    perm = jnp.concatenate(
        [jnp.arange(0, 2 * H), jnp.arange(3 * H, 4 * H), jnp.arange(2 * H, 3 * H)]
    )
    w_ih_t = jnp.transpose(w_ih[perm])                 # (I, 4H)
    w_hh_t = jnp.transpose(w_hh[perm])                 # (H, 4H)
    b_comb = (b_ih + b_hh)[perm].reshape(1, 4 * H)     # (1, 4H)
    fc_on_vpu = (O == 1)
    w_fc_k = w_fc if fc_on_vpu else jnp.transpose(w_fc)   # (1,H) or (H,O)
    b_fc2 = b_fc.reshape(1, O)                             # (1, O)
    return {
        "w_ih_t": w_ih_t, "w_hh_t": w_hh_t, "b_comb": b_comb,
        "w_fc_k": w_fc_k, "b_fc2": b_fc2,
        "H": H, "O": O, "fc_on_vpu": fc_on_vpu,
    }


def lstm_model_forward(x, prepped):
    """x: (B, T, I) float32 -> (B, O) float32."""
    B, T, I = x.shape
    H, O = prepped["H"], prepped["O"]

    # Pad batch (sublane axis) up to the 8-row tile floor.
    B_pad = max(8, ((B + 7) // 8) * 8)
    x_p = jnp.pad(x, ((0, B_pad - B), (0, 0), (0, 0))) if B_pad != B else x

    # Hoisted input projection: one big XLA matmul, output already in (T, B, 4H)
    # layout so the kernel never touches the lane-sparse (.., I=1) tensor.
    xw = jnp.einsum("bti,ik->tbk", x_p, prepped["w_ih_t"]) + prepped["b_comb"]

    vmem = pl.BlockSpec(memory_space=pltpu.MemorySpace.VMEM)
    kernel = _make_lstm_kernel(H, O, prepped["fc_on_vpu"])
    out_p = pl.pallas_call(
        kernel,
        out_shape=jax.ShapeDtypeStruct((B_pad, O), jnp.float32),
        in_specs=[vmem] * 4,
        out_specs=vmem,
    )(xw, prepped["w_hh_t"], prepped["w_fc_k"], prepped["b_fc2"])
    return out_p[:B]


def lstm_model_reference(x, params):
    """Pure-JAX reference replicating torch.nn.LSTM(batch_first=True) + Linear."""
    w_ih, w_hh, b_ih, b_hh, w_fc, b_fc = (
        params["w_ih"], params["w_hh"], params["b_ih"],
        params["b_hh"], params["w_fc"], params["b_fc"],
    )
    B, T, I = x.shape
    H = w_hh.shape[1]
    h = jnp.zeros((B, H), jnp.float32)
    c = jnp.zeros((B, H), jnp.float32)
    for t in range(T):
        gates = x[:, t, :] @ w_ih.T + h @ w_hh.T + b_ih + b_hh
        i_g = jax.nn.sigmoid(gates[:, 0:H])
        f_g = jax.nn.sigmoid(gates[:, H:2 * H])
        g_g = jnp.tanh(gates[:, 2 * H:3 * H])
        o_g = jax.nn.sigmoid(gates[:, 3 * H:4 * H])
        c = f_g * c + i_g * g_g
        h = o_g * jnp.tanh(c)
    return h @ w_fc.T + b_fc


def init_params(key, input_size, hidden_size, output_size):
    # PyTorch parameter shapes:
    # LSTM: weight_ih_l0 (4H, I), weight_hh_l0 (4H, H), bias_ih_l0 (4H,), bias_hh_l0 (4H,)
    # Linear: weight (O, H), bias (O,)
    ks = jax.random.split(key, 6)
    k_lstm = 1.0 / jnp.sqrt(hidden_size)
    k_fc = 1.0 / jnp.sqrt(hidden_size)
    return {
        "w_ih": jax.random.uniform(ks[0], (4 * hidden_size, input_size),
                                   jnp.float32, -k_lstm, k_lstm),
        "w_hh": jax.random.uniform(ks[1], (4 * hidden_size, hidden_size),
                                   jnp.float32, -k_lstm, k_lstm),
        "b_ih": jax.random.uniform(ks[2], (4 * hidden_size,),
                                   jnp.float32, -k_lstm, k_lstm),
        "b_hh": jax.random.uniform(ks[3], (4 * hidden_size,),
                                   jnp.float32, -k_lstm, k_lstm),
        "w_fc": jax.random.uniform(ks[4], (output_size, hidden_size),
                                   jnp.float32, -k_fc, k_fc),
        "b_fc": jax.random.uniform(ks[5], (output_size,),
                                   jnp.float32, -k_fc, k_fc),
    }


if __name__ == "__main__":
    input_size = 1
    hidden_size = 64
    output_size = 1
    batch = 4
    seq = 8

    key = jax.random.PRNGKey(0)
    k_x, k_p = jax.random.split(key)
    x = jax.random.normal(k_x, (batch, seq, input_size), jnp.float32)
    params = init_params(k_p, input_size, hidden_size, output_size)

    # One-time parameter preparation (gate reorder, transposes, bias combine).
    prepped = prepare_params(params)

    # Jit the wrapper so the hoisted projection / padding fuse with the pallas_call.
    fwd = jax.jit(lambda xx: lstm_model_forward(xx, prepped))
    out = fwd(x)
    out = jax.block_until_ready(out)

    ref = lstm_model_reference(x, params)
    assert out.shape == (batch, output_size)
    assert jnp.allclose(out, ref, atol=1e-5, rtol=1e-5), (out, ref)
    print("KERNEL_OK")
</pallas_src>

<mosaic_0001>
module attributes {stable_mosaic.version = 11 : i64} {
  func.func @kernel(%arg0: memref<8x8x256xf32, #tpu.memory_space<vmem>>, %arg1: memref<64x256xf32, #tpu.memory_space<vmem>>, %arg2: memref<1x64xf32, #tpu.memory_space<vmem>>, %arg3: memref<1x1xf32, #tpu.memory_space<vmem>>, %arg4: memref<8x1xf32, #tpu.memory_space<vmem>>) attributes {dimension_semantics = [], scalar_prefetch = 0 : i64, scratch_operands = 0 : i64, tpu.core_type = #tpu.core_type<tc>} {
    %c0 = arith.constant 0 : index
    %c0_0 = arith.constant 0 : index
    %0 = vector.load %arg1[%c0, %c0_0] : memref<64x256xf32, #tpu.memory_space<vmem>>, vector<64x256xf32>
    %cst = arith.constant 0.000000e+00 : f32
    %1 = vector.broadcast %cst : f32 to vector<8x64xf32>
    %cst_1 = arith.constant 0.000000e+00 : f32
    %2 = vector.broadcast %cst_1 : f32 to vector<8x64xf32>
    %c0_i32 = arith.constant 0 : i32
    %3 = arith.index_cast %c0_i32 : i32 to index
    %c0_2 = arith.constant 0 : index
    %c0_3 = arith.constant 0 : index
    %4 = vector.load %arg0[%3, %c0_2, %c0_3] : memref<8x8x256xf32, #tpu.memory_space<vmem>>, vector<1x8x256xf32>
    %5 = vector.shape_cast %4 : vector<1x8x256xf32> to vector<8x256xf32>
    %cst_4 = arith.constant dense<0.000000e+00> : vector<8x256xf32>
    %6 = tpu.matmul %1, %0, %cst_4 {dimension_numbers = #tpu.dot_dimension_numbers<[1], [0], [0], [1], [0, 0, 1, 1], [], []>} : vector<8x64xf32>, vector<64x256xf32>, vector<8x256xf32> -> vector<8x256xf32>
    %7 = arith.addf %5, %6 : vector<8x256xf32>
    %8 = vector.extract_strided_slice %7 {offsets = [0, 0], sizes = [8, 192], strides = [1, 1]} : vector<8x256xf32> to vector<8x192xf32>
    %9 = arith.negf %8 : vector<8x192xf32>
    %10 = math.exp %9 : vector<8x192xf32>
    %cst_5 = arith.constant 1.000000e+00 : f32
    %11 = vector.broadcast %cst_5 : f32 to vector<8x192xf32>
    %12 = arith.addf %11, %10 : vector<8x192xf32>
    %13 = arith.divf %11, %12 : vector<8x192xf32>
    %14 = vector.extract_strided_slice %13 {offsets = [0, 0], sizes = [8, 64], strides = [1, 1]} : vector<8x192xf32> to vector<8x64xf32>
    %15 = vector.extract_strided_slice %13 {offsets = [0, 64], sizes = [8, 64], strides = [1, 1]} : vector<8x192xf32> to vector<8x64xf32>
    %16 = vector.extract_strided_slice %13 {offsets = [0, 128], sizes = [8, 64], strides = [1, 1]} : vector<8x192xf32> to vector<8x64xf32>
    %17 = vector.extract_strided_slice %7 {offsets = [0, 192], sizes = [8, 64], strides = [1, 1]} : vector<8x256xf32> to vector<8x64xf32>
    %18 = math.tanh %17 : vector<8x64xf32>
    %19 = arith.mulf %15, %2 : vector<8x64xf32>
    %20 = arith.mulf %14, %18 : vector<8x64xf32>
    %21 = arith.addf %19, %20 : vector<8x64xf32>
    %22 = math.tanh %21 : vector<8x64xf32>
    %23 = arith.mulf %16, %22 : vector<8x64xf32>
    %c1_i32 = arith.constant 1 : i32
    %24 = arith.index_cast %c1_i32 : i32 to index
    %c0_6 = arith.constant 0 : index
    %c0_7 = arith.constant 0 : index
    %25 = vector.load %arg0[%24, %c0_6, %c0_7] : memref<8x8x256xf32, #tpu.memory_space<vmem>>, vector<1x8x256xf32>
    %26 = vector.shape_cast %25 : vector<1x8x256xf32> to vector<8x256xf32>
    %cst_8 = arith.constant dense<0.000000e+00> : vector<8x256xf32>
    %27 = tpu.matmul %23, %0, %cst_8 {dimension_numbers = #tpu.dot_dimension_numbers<[1], [0], [0], [1], [0, 0, 1, 1], [], []>} : vector<8x64xf32>, vector<64x256xf32>, vector<8x256xf32> -> vector<8x256xf32>
    %28 = arith.addf %26, %27 : vector<8x256xf32>
    %29 = vector.extract_strided_slice %28 {offsets = [0, 0], sizes = [8, 192], strides = [1, 1]} : vector<8x256xf32> to vector<8x192xf32>
    %30 = arith.negf %29 : vector<8x192xf32>
    %31 = math.exp %30 : vector<8x192xf32>
    %cst_9 = arith.constant 1.000000e+00 : f32
    %32 = vector.broadcast %cst_9 : f32 to vector<8x192xf32>
    %33 = arith.addf %32, %31 : vector<8x192xf32>
    %34 = arith.divf %32, %33 : vector<8x192xf32>
    %35 = vector.extract_strided_slice %34 {offsets = [0, 0], sizes = [8, 64], strides = [1, 1]} : vector<8x192xf32> to vector<8x64xf32>
    %36 = vector.extract_strided_slice %34 {offsets = [0, 64], sizes = [8, 64], strides = [1, 1]} : vector<8x192xf32> to vector<8x64xf32>
    %37 = vector.extract_strided_slice %34 {offsets = [0, 128], sizes = [8, 64], strides = [1, 1]} : vector<8x192xf32> to vector<8x64xf32>
    %38 = vector.extract_strided_slice %28 {offsets = [0, 192], sizes = [8, 64], strides = [1, 1]} : vector<8x256xf32> to vector<8x64xf32>
    %39 = math.tanh %38 : vector<8x64xf32>
    %40 = arith.mulf %36, %21 : vector<8x64xf32>
    %41 = arith.mulf %35, %39 : vector<8x64xf32>
    %42 = arith.addf %40, %41 : vector<8x64xf32>
    %43 = math.tanh %42 : vector<8x64xf32>
    %44 = arith.mulf %37, %43 : vector<8x64xf32>
    %c2_i32 = arith.constant 2 : i32
    %45 = arith.index_cast %c2_i32 : i32 to index
    %c0_10 = arith.constant 0 : index
    %c0_11 = arith.constant 0 : index
    %46 = vector.load %arg0[%45, %c0_10, %c0_11] : memref<8x8x256xf32, #tpu.memory_space<vmem>>, vector<1x8x256xf32>
    %47 = vector.shape_cast %46 : vector<1x8x256xf32> to vector<8x256xf32>
    %cst_12 = arith.constant dense<0.000000e+00> : vector<8x256xf32>
    %48 = tpu.matmul %44, %0, %cst_12 {dimension_numbers = #tpu.dot_dimension_numbers<[1], [0], [0], [1], [0, 0, 1, 1], [], []>} : vector<8x64xf32>, vector<64x256xf32>, vector<8x256xf32> -> vector<8x256xf32>
    %49 = arith.addf %47, %48 : vector<8x256xf32>
    %50 = vector.extract_strided_slice %49 {offsets = [0, 0], sizes = [8, 192], strides = [1, 1]} : vector<8x256xf32> to vector<8x192xf32>
    %51 = arith.negf %50 : vector<8x192xf32>
    %52 = math.exp %51 : vector<8x192xf32>
    %cst_13 = arith.constant 1.000000e+00 : f32
    %53 = vector.broadcast %cst_13 : f32 to vector<8x192xf32>
    %54 = arith.addf %53, %52 : vector<8x192xf32>
    %55 = arith.divf %53, %54 : vector<8x192xf32>
    %56 = vector.extract_strided_slice %55 {offsets = [0, 0], sizes = [8, 64], strides = [1, 1]} : vector<8x192xf32> to vector<8x64xf32>
    %57 = vector.extract_strided_slice %55 {offsets = [0, 64], sizes = [8, 64], strides = [1, 1]} : vector<8x192xf32> to vector<8x64xf32>
    %58 = vector.extract_strided_slice %55 {offsets = [0, 128], sizes = [8, 64], strides = [1, 1]} : vector<8x192xf32> to vector<8x64xf32>
    %59 = vector.extract_strided_slice %49 {offsets = [0, 192], sizes = [8, 64], strides = [1, 1]} : vector<8x256xf32> to vector<8x64xf32>
    %60 = math.tanh %59 : vector<8x64xf32>
    %61 = arith.mulf %57, %42 : vector<8x64xf32>
    %62 = arith.mulf %56, %60 : vector<8x64xf32>
    %63 = arith.addf %61, %62 : vector<8x64xf32>
    %64 = math.tanh %63 : vector<8x64xf32>
    %65 = arith.mulf %58, %64 : vector<8x64xf32>
    %c3_i32 = arith.constant 3 : i32
    %66 = arith.index_cast %c3_i32 : i32 to index
    %c0_14 = arith.constant 0 : index
    %c0_15 = arith.constant 0 : index
    %67 = vector.load %arg0[%66, %c0_14, %c0_15] : memref<8x8x256xf32, #tpu.memory_space<vmem>>, vector<1x8x256xf32>
    %68 = vector.shape_cast %67 : vector<1x8x256xf32> to vector<8x256xf32>
    %cst_16 = arith.constant dense<0.000000e+00> : vector<8x256xf32>
    %69 = tpu.matmul %65, %0, %cst_16 {dimension_numbers = #tpu.dot_dimension_numbers<[1], [0], [0], [1], [0, 0, 1, 1], [], []>} : vector<8x64xf32>, vector<64x256xf32>, vector<8x256xf32> -> vector<8x256xf32>
    %70 = arith.addf %68, %69 : vector<8x256xf32>
    %71 = vector.extract_strided_slice %70 {offsets = [0, 0], sizes = [8, 192], strides = [1, 1]} : vector<8x256xf32> to vector<8x192xf32>
    %72 = arith.negf %71 : vector<8x192xf32>
    %73 = math.exp %72 : vector<8x192xf32>
    %cst_17 = arith.constant 1.000000e+00 : f32
    %74 = vector.broadcast %cst_17 : f32 to vector<8x192xf32>
    %75 = arith.addf %74, %73 : vector<8x192xf32>
    %76 = arith.divf %74, %75 : vector<8x192xf32>
    %77 = vector.extract_strided_slice %76 {offsets = [0, 0], sizes = [8, 64], strides = [1, 1]} : vector<8x192xf32> to vector<8x64xf32>
    %78 = vector.extract_strided_slice %76 {offsets = [0, 64], sizes = [8, 64], strides = [1, 1]} : vector<8x192xf32> to vector<8x64xf32>
    %79 = vector.extract_strided_slice %76 {offsets = [0, 128], sizes = [8, 64], strides = [1, 1]} : vector<8x192xf32> to vector<8x64xf32>
    %80 = vector.extract_strided_slice %70 {offsets = [0, 192], sizes = [8, 64], strides = [1, 1]} : vector<8x256xf32> to vector<8x64xf32>
    %81 = math.tanh %80 : vector<8x64xf32>
    %82 = arith.mulf %78, %63 : vector<8x64xf32>
    %83 = arith.mulf %77, %81 : vector<8x64xf32>
    %84 = arith.addf %82, %83 : vector<8x64xf32>
    %85 = math.tanh %84 : vector<8x64xf32>
    %86 = arith.mulf %79, %85 : vector<8x64xf32>
    %c4_i32 = arith.constant 4 : i32
    %87 = arith.index_cast %c4_i32 : i32 to index
    %c0_18 = arith.constant 0 : index
    %c0_19 = arith.constant 0 : index
    %88 = vector.load %arg0[%87, %c0_18, %c0_19] : memref<8x8x256xf32, #tpu.memory_space<vmem>>, vector<1x8x256xf32>
    %89 = vector.shape_cast %88 : vector<1x8x256xf32> to vector<8x256xf32>
    %cst_20 = arith.constant dense<0.000000e+00> : vector<8x256xf32>
    %90 = tpu.matmul %86, %0, %cst_20 {dimension_numbers = #tpu.dot_dimension_numbers<[1], [0], [0], [1], [0, 0, 1, 1], [], []>} : vector<8x64xf32>, vector<64x256xf32>, vector<8x256xf32> -> vector<8x256xf32>
    %91 = arith.addf %89, %90 : vector<8x256xf32>
    %92 = vector.extract_strided_slice %91 {offsets = [0, 0], sizes = [8, 192], strides = [1, 1]} : vector<8x256xf32> to vector<8x192xf32>
    %93 = arith.negf %92 : vector<8x192xf32>
    %94 = math.exp %93 : vector<8x192xf32>
    %cst_21 = arith.constant 1.000000e+00 : f32
    %95 = vector.broadcast %cst_21 : f32 to vector<8x192xf32>
    %96 = arith.addf %95, %94 : vector<8x192xf32>
    %97 = arith.divf %95, %96 : vector<8x192xf32>
    %98 = vector.extract_strided_slice %97 {offsets = [0, 0], sizes = [8, 64], strides = [1, 1]} : vector<8x192xf32> to vector<8x64xf32>
    %99 = vector.extract_strided_slice %97 {offsets = [0, 64], sizes = [8, 64], strides = [1, 1]} : vector<8x192xf32> to vector<8x64xf32>
    %100 = vector.extract_strided_slice %97 {offsets = [0, 128], sizes = [8, 64], strides = [1, 1]} : vector<8x192xf32> to vector<8x64xf32>
    %101 = vector.extract_strided_slice %91 {offsets = [0, 192], sizes = [8, 64], strides = [1, 1]} : vector<8x256xf32> to vector<8x64xf32>
    %102 = math.tanh %101 : vector<8x64xf32>
    %103 = arith.mulf %99, %84 : vector<8x64xf32>
    %104 = arith.mulf %98, %102 : vector<8x64xf32>
    %105 = arith.addf %103, %104 : vector<8x64xf32>
    %106 = math.tanh %105 : vector<8x64xf32>
    %107 = arith.mulf %100, %106 : vector<8x64xf32>
    %c5_i32 = arith.constant 5 : i32
    %108 = arith.index_cast %c5_i32 : i32 to index
    %c0_22 = arith.constant 0 : index
    %c0_23 = arith.constant 0 : index
    %109 = vector.load %arg0[%108, %c0_22, %c0_23] : memref<8x8x256xf32, #tpu.memory_space<vmem>>, vector<1x8x256xf32>
    %110 = vector.shape_cast %109 : vector<1x8x256xf32> to vector<8x256xf32>
    %cst_24 = arith.constant dense<0.000000e+00> : vector<8x256xf32>
    %111 = tpu.matmul %107, %0, %cst_24 {dimension_numbers = #tpu.dot_dimension_numbers<[1], [0], [0], [1], [0, 0, 1, 1], [], []>} : vector<8x64xf32>, vector<64x256xf32>, vector<8x256xf32> -> vector<8x256xf32>
    %112 = arith.addf %110, %111 : vector<8x256xf32>
    %113 = vector.extract_strided_slice %112 {offsets = [0, 0], sizes = [8, 192], strides = [1, 1]} : vector<8x256xf32> to vector<8x192xf32>
    %114 = arith.negf %113 : vector<8x192xf32>
    %115 = math.exp %114 : vector<8x192xf32>
    %cst_25 = arith.constant 1.000000e+00 : f32
    %116 = vector.broadcast %cst_25 : f32 to vector<8x192xf32>
    %117 = arith.addf %116, %115 : vector<8x192xf32>
    %118 = arith.divf %116, %117 : vector<8x192xf32>
    %119 = vector.extract_strided_slice %118 {offsets = [0, 0], sizes = [8, 64], strides = [1, 1]} : vector<8x192xf32> to vector<8x64xf32>
    %120 = vector.extract_strided_slice %118 {offsets = [0, 64], sizes = [8, 64], strides = [1, 1]} : vector<8x192xf32> to vector<8x64xf32>
    %121 = vector.extract_strided_slice %118 {offsets = [0, 128], sizes = [8, 64], strides = [1, 1]} : vector<8x192xf32> to vector<8x64xf32>
    %122 = vector.extract_strided_slice %112 {offsets = [0, 192], sizes = [8, 64], strides = [1, 1]} : vector<8x256xf32> to vector<8x64xf32>
    %123 = math.tanh %122 : vector<8x64xf32>
    %124 = arith.mulf %120, %105 : vector<8x64xf32>
    %125 = arith.mulf %119, %123 : vector<8x64xf32>
    %126 = arith.addf %124, %125 : vector<8x64xf32>
    %127 = math.tanh %126 : vector<8x64xf32>
    %128 = arith.mulf %121, %127 : vector<8x64xf32>
    %c6_i32 = arith.constant 6 : i32
    %129 = arith.index_cast %c6_i32 : i32 to index
    %c0_26 = arith.constant 0 : index
    %c0_27 = arith.constant 0 : index
    %130 = vector.load %arg0[%129, %c0_26, %c0_27] : memref<8x8x256xf32, #tpu.memory_space<vmem>>, vector<1x8x256xf32>
    %131 = vector.shape_cast %130 : vector<1x8x256xf32> to vector<8x256xf32>
    %cst_28 = arith.constant dense<0.000000e+00> : vector<8x256xf32>
    %132 = tpu.matmul %128, %0, %cst_28 {dimension_numbers = #tpu.dot_dimension_numbers<[1], [0], [0], [1], [0, 0, 1, 1], [], []>} : vector<8x64xf32>, vector<64x256xf32>, vector<8x256xf32> -> vector<8x256xf32>
    %133 = arith.addf %131, %132 : vector<8x256xf32>
    %134 = vector.extract_strided_slice %133 {offsets = [0, 0], sizes = [8, 192], strides = [1, 1]} : vector<8x256xf32> to vector<8x192xf32>
    %135 = arith.negf %134 : vector<8x192xf32>
    %136 = math.exp %135 : vector<8x192xf32>
    %cst_29 = arith.constant 1.000000e+00 : f32
    %137 = vector.broadcast %cst_29 : f32 to vector<8x192xf32>
    %138 = arith.addf %137, %136 : vector<8x192xf32>
    %139 = arith.divf %137, %138 : vector<8x192xf32>
    %140 = vector.extract_strided_slice %139 {offsets = [0, 0], sizes = [8, 64], strides = [1, 1]} : vector<8x192xf32> to vector<8x64xf32>
    %141 = vector.extract_strided_slice %139 {offsets = [0, 64], sizes = [8, 64], strides = [1, 1]} : vector<8x192xf32> to vector<8x64xf32>
    %142 = vector.extract_strided_slice %139 {offsets = [0, 128], sizes = [8, 64], strides = [1, 1]} : vector<8x192xf32> to vector<8x64xf32>
    %143 = vector.extract_strided_slice %133 {offsets = [0, 192], sizes = [8, 64], strides = [1, 1]} : vector<8x256xf32> to vector<8x64xf32>
    %144 = math.tanh %143 : vector<8x64xf32>
    %145 = arith.mulf %141, %126 : vector<8x64xf32>
    %146 = arith.mulf %140, %144 : vector<8x64xf32>
    %147 = arith.addf %145, %146 : vector<8x64xf32>
    %148 = math.tanh %147 : vector<8x64xf32>
    %149 = arith.mulf %142, %148 : vector<8x64xf32>
    %c7_i32 = arith.constant 7 : i32
    %150 = arith.index_cast %c7_i32 : i32 to index
    %c0_30 = arith.constant 0 : index
    %c0_31 = arith.constant 0 : index
    %151 = vector.load %arg0[%150, %c0_30, %c0_31] : memref<8x8x256xf32, #tpu.memory_space<vmem>>, vector<1x8x256xf32>
    %152 = vector.shape_cast %151 : vector<1x8x256xf32> to vector<8x256xf32>
    %cst_32 = arith.constant dense<0.000000e+00> : vector<8x256xf32>
    %153 = tpu.matmul %149, %0, %cst_32 {dimension_numbers = #tpu.dot_dimension_numbers<[1], [0], [0], [1], [0, 0, 1, 1], [], []>} : vector<8x64xf32>, vector<64x256xf32>, vector<8x256xf32> -> vector<8x256xf32>
    %154 = arith.addf %152, %153 : vector<8x256xf32>
    %155 = vector.extract_strided_slice %154 {offsets = [0, 0], sizes = [8, 192], strides = [1, 1]} : vector<8x256xf32> to vector<8x192xf32>
    %156 = arith.negf %155 : vector<8x192xf32>
    %157 = math.exp %156 : vector<8x192xf32>
    %cst_33 = arith.constant 1.000000e+00 : f32
    %158 = vector.broadcast %cst_33 : f32 to vector<8x192xf32>
    %159 = arith.addf %158, %157 : vector<8x192xf32>
    %160 = arith.divf %158, %159 : vector<8x192xf32>
    %161 = vector.extract_strided_slice %160 {offsets = [0, 0], sizes = [8, 64], strides = [1, 1]} : vector<8x192xf32> to vector<8x64xf32>
    %162 = vector.extract_strided_slice %160 {offsets = [0, 64], sizes = [8, 64], strides = [1, 1]} : vector<8x192xf32> to vector<8x64xf32>
    %163 = vector.extract_strided_slice %160 {offsets = [0, 128], sizes = [8, 64], strides = [1, 1]} : vector<8x192xf32> to vector<8x64xf32>
    %164 = vector.extract_strided_slice %154 {offsets = [0, 192], sizes = [8, 64], strides = [1, 1]} : vector<8x256xf32> to vector<8x64xf32>
    %165 = math.tanh %164 : vector<8x64xf32>
    %166 = arith.mulf %162, %147 : vector<8x64xf32>
    %167 = arith.mulf %161, %165 : vector<8x64xf32>
    %168 = arith.addf %166, %167 : vector<8x64xf32>
    %169 = math.tanh %168 : vector<8x64xf32>
    %170 = arith.mulf %163, %169 : vector<8x64xf32>
    %c8_i32 = arith.constant 8 : i32
    %c0_34 = arith.constant 0 : index
    %c0_35 = arith.constant 0 : index
    %171 = vector.load %arg2[%c0_34, %c0_35] : memref<1x64xf32, #tpu.memory_space<vmem>>, vector<1x64xf32>
    %172 = vector.broadcast %171 : vector<1x64xf32> to vector<8x64xf32>
    %173 = arith.mulf %170, %172 : vector<8x64xf32>
    %cst_36 = arith.constant dense<0.000000e+00> : vector<8xf32>
    %174 = vector.multi_reduction <add>, %173, %cst_36 [1] : vector<8x64xf32> to vector<8xf32>
    %175 = vector.shape_cast %174 : vector<8xf32> to vector<8x1xf32>
    %c0_37 = arith.constant 0 : index
    %c0_38 = arith.constant 0 : index
    %176 = vector.load %arg3[%c0_37, %c0_38] : memref<1x1xf32, #tpu.memory_space<vmem>>, vector<1x1xf32>
    %177 = vector.broadcast %176 : vector<1x1xf32> to vector<8x1xf32>
    %178 = arith.addf %175, %177 : vector<8x1xf32>
    %c0_39 = arith.constant 0 : index
    %c0_40 = arith.constant 0 : index
    %179 = vector.load %arg4[%c0_39, %c0_40] : memref<8x1xf32, #tpu.memory_space<vmem>>, vector<8x1xf32>
    tpu.vector_store %arg4[%c0_39, %c0_40], %178 {strides = array<i32>} : memref<8x1xf32, #tpu.memory_space<vmem>>, vector<8x1xf32>,
    return
  }
}

</mosaic_0001>

<bundles_post_ra>
// kernel: _lambda_.1
= control target key start
LH: loop header
LB: loop body
LE: loop exit
PB: predicated region body
PF: predicated region fallthrough
CT: control target
= control target key end

     0   :  { %v1197_v3 = vmov 0.0   ;;  %s1198_s22 = smov 64   ;;  %vm37_vm0 = vcmask 523264   ;;  %vm926_vm1 = vcmask 7168   ;;  %s1450_s1 = inlined_call_operand.vmem [shape: f32[64,256], index: 1, kind: input, shape index: {}]   ;;  %s1451_s0 = inlined_call_operand.vmem [shape: f32[8,8,256], index: 0, kind: input, shape index: {}]   ;;  %s1452_s3 = inlined_call_operand.<no memory space> [shape: f32[1,1], index: 3, kind: input, shape index: {}]   ;;  %s1453_s2 = inlined_call_operand.vmem [shape: f32[1,64], index: 2, kind: input, shape index: {}]   ;;  %s1454_s4 = inlined_call_operand.vmem [shape: f32[8,1], index: 4, kind: output, shape index: {}]  }
   0x1   :  { %v20_v0 = vld [vmem:[%s1450_s1 + $0x8] sm:$0xff]  ;;  %v22_v1 = vld [vmem:[%s1450_s1 + $0x18] sm:$0xff]  ;;  %v19_v2 = vld [vmem:[%s1450_s1] sm:$0xff]  ;;  %105 = vmatprep.mubr.f32.mxu0 %v1197_v3  ;;  %214 = vmatprep.mubr.f32.mxu1 %v1197_v3 }
   0x2   :  { %v1235_v4 = vpack.c.bf16 %v22_v1, %v20_v0  ;;  %v21_v5 = vld [vmem:[%s1450_s1 + $0x10] sm:$0xff]  ;;  %v24_v6 = vld [vmem:[%s1450_s1 + $0x28] sm:$0xff]  ;;  %v26_v7 = vld [vmem:[%s1450_s1 + $0x38] sm:$0xff] }
   0x3   :  { %v1246_v8 = vpack.c.bf16 %v21_v5, %v19_v2  ;;  %v1248_v9 = vpack.c.bf16 %v26_v7, %v24_v6  ;;  %v23_v10 = vld [vmem:[%s1450_s1 + $0x20] sm:$0xff]  ;;  %v25_v11 = vld [vmem:[%s1450_s1 + $0x30] sm:$0xff]  ;;  %v28_v12 = vld [vmem:[%s1450_s1 + $0x48] sm:$0xff] }
   0x4   :  { %972 = vmatprep.subr.bf16.mxu0 %v1235_v4  ;;  %v30_v13 = vld [vmem:[%s1450_s1 + $0x58] sm:$0xff]  ;;  %988 = vmatprep.subr.bf16.mxu1 %v1235_v4  ;;  %v1265_v14 = vpack.c.bf16 %v25_v11, %v23_v10  ;;  %v27_v16 = vld [vmem:[%s1450_s1 + $0x40] sm:$0xff]  ;;  %v29_v17 = vld [vmem:[%s1450_s1 + $0x50] sm:$0xff] }
   0x5   :  { %974 = vmatpush1.bf16.msra.mxu0 %v1246_v8  ;;  %990 = vmatpush1.bf16.msra.mxu1 %v1246_v8  ;;  %v1269_v15 = vpack.c.bf16 %v30_v13, %v28_v12  ;;  %v32_v18 = vld [vmem:[%s1450_s1 + $0x68] sm:$0xff]  ;;  %v34_v19 = vld [vmem:[%s1450_s1 + $0x78] sm:$0xff]  ;;  %v1285_v20 = vpack.c.bf16 %v29_v17, %v27_v16  ;;  %v31_v22 = vld [vmem:[%s1450_s1 + $0x60] sm:$0xff] }
   0x6   :  { %976 = vmatprep.subr.bf16.mxu0 %v1248_v9  ;;  %992 = vmatprep.subr.bf16.mxu1 %v1248_v9  ;;  %v1289_v21 = vpack.c.bf16 %v34_v19, %v32_v18  ;;  %v33_v23 = vld [vmem:[%s1450_s1 + $0x70] sm:$0xff]  ;;  %v36_v25 = vld [vmem:[%s1451_s0 + $0x8] sm:$0xff]  ;;  %v35_v30 = vld [vmem:[%s1451_s0] sm:$0xff] }
   0x7   :  { %v1299_v24 = vpack.c.bf16 %v33_v23, %v31_v22  ;;  %v935_v48 = vld [vmem:[%s1451_s0 + $0x18] sm:$0xff]  ;;  %v934_v53 = vld [vmem:[%s1451_s0 + $0x10] sm:$0xff]  ;;  %v940_v11 = vld [vmem:[%s1451_s0 + $0x28] sm:$0xff] }
   0x8   :  { %v939_v18 = vld [vmem:[%s1451_s0 + $0x20] sm:$0xff] }
   0x9   :  { %978 = vmatpush1.bf16.msra.mxu0 %v1265_v14  ;;  %994 = vmatpush1.bf16.msra.mxu1 %v1265_v14 }
   0xa   :  { %980 = vmatprep.subr.bf16.mxu0 %v1269_v15  ;;  %996 = vmatprep.subr.bf16.mxu1 %v1269_v15 }
   0xd   :  { %982 = vmatpush1.bf16.msra.mxu0 %v1285_v20  ;;  %998 = vmatpush1.bf16.msra.mxu1 %v1285_v20 }
   0xe   :  { %984 = vmatprep.subr.bf16.mxu0 %v1289_v21  ;;  %1000 = vmatprep.subr.bf16.mxu1 %v1289_v21 }
  0x11   :  { %986 = vmatpush1.bf16.msra.mxu0 %v1299_v24  ;;  %1002 = vmatpush1.bf16.msra.mxu1 %v1299_v24 }
  0x12   :  { %1004 = vmatprep.subr.bf16.mxu0 %v1235_v4  ;;  %1020 = vmatprep.subr.bf16.mxu1 %v1235_v4 }
  0x14   :  { %106 = vmatmul.mubr.f32.vlgmr.msra.gmra.mrb[0].mxu0 %v1197_v3 }
  0x15   :  { %1006 = vmatpush1.bf16.msra.mxu0 %v1246_v8  ;;  %323 = vmatprep.mubr.f32.mxu0 %v1197_v3 }
  0x16   :  { %1008 = vmatprep.subr.bf16.mxu0 %v1248_v9 }
  0x19   :  { %1010 = vmatpush1.bf16.msra.mxu0 %v1265_v14 }
  0x1a   :  { %1012 = vmatprep.subr.bf16.mxu0 %v1269_v15 }
  0x1d   :  { %1014 = vmatpush1.bf16.msra.mxu0 %v1285_v20 }
  0x1e   :  { %1016 = vmatprep.subr.bf16.mxu0 %v1289_v21 }
  0x21   :  { %1018 = vmatpush1.bf16.msra.mxu0 %v1299_v24 }
  0x22   :  { %1036 = vmatprep.subr.bf16.mxu0 %v1235_v4 }
  0xe7   :  { %v107_v26 = vpop.f32.mrb[0].mxu0 }
  0xe8   :  { %v109_v27 = vpop.f32.mrb[1].mxu0  ;;  %v112_v31 = vadd.f32 %v107_v26, %v35_v30 }
  0xe9   :  { %v113_v28 = vadd.f32 %v109_v27, %v36_v25 }
  0xea   :  { %v932_v32 = vmul.f32 -1.442695, %v112_v31 }
  0xeb   :  { %1101 = vtanh.f32 %v113_v28  ;;  %v933_v42 = vmul.f32 -1.442695, %v113_v28 }
  0xec   :  { %1103 = vpow2.f32 %v932_v32 }
  0xf5   :  { %v1102_v29 = vpop.eup %1101 }
  0xf6   :  { %129 = vrot.lane.b32.xlu0 %v1102_v29, %s1198_s22  ;;  %v1104_v33 = vpop.eup %1103 }
  0xf7   :  { %v120_v34 = vadd.f32 1.0, %v1104_v33 }
  0xf9   :  { %1105 = vrcp.f32 %v120_v34 }
 0x103   :  { %v1106_v35 = vpop.eup %1105 }
 0x104   :  { %v127_v38 = vmul.f32 0.0, %v1106_v35 }
 0x168   :  { %v130_v36 = vpop.permute.xlu0 %129 }
 0x169   :  { %v132_v37 = vmul.f32 %v1106_v35, %v130_v36 }
 0x16b   :  { %134 = vrot.lane.b32.xlu0 %v132_v37, %s1198_s22 }
 0x1dd   :  { %v135_v39 = vpop.permute.xlu0 %134 }
 0x1de   :  { %v137_v40 = vadd.f32 %v135_v39, %v127_v38  ;;  %v945_v39 = vld [vmem:[%s1451_s0 + $0x38] sm:$0xff] }
 0x1e0   :  { %1107 = vtanh.f32 %v137_v40 }
 0x1e1   :  { %1109 = vpow2.f32 %v933_v42 }
 0x1ea   :  { %v1108_v41 = vpop.eup %1107 }
 0x1eb   :  { %140 = vrot.lane.b32.xlu1 %v1108_v41, %s1198_s22  ;;  %v1110_v43 = vpop.eup %1109 }
 0x1ec   :  { %v121_v44 = vadd.f32 1.0, %v1110_v43 }
 0x1ee   :  { %1111 = vrcp.f32 %v121_v44  ;;  %v944_v44 = vld [vmem:[%s1451_s0 + $0x30] sm:$0xff] }
 0x1f8   :  { %v1112_v45 = vpop.eup %1111 }
 0x25d   :  { %v141_v46 = vpop.permute.xlu1 %140 }
 0x25e   :  { %v143_v47 = vmul.f32 %v1112_v45, %v141_v46 }
 0x260   :  { %936 = vmatmul.mubr.msk.f32.vlgmr.msra.gmra.mrb[0].mxu1 %vm37_vm0, %v143_v47 }
 0x261   :  { %1022 = vmatpush1.bf16.msra.mxu1 %v1246_v8  ;;  %432 = vmatprep.mubr.f32.mxu1 %v1197_v3 }
 0x262   :  { %1024 = vmatprep.subr.bf16.mxu1 %v1248_v9 }
 0x265   :  { %1026 = vmatpush1.bf16.msra.mxu1 %v1265_v14 }
 0x266   :  { %1028 = vmatprep.subr.bf16.mxu1 %v1269_v15 }
 0x269   :  { %1030 = vmatpush1.bf16.msra.mxu1 %v1285_v20 }
 0x26a   :  { %1032 = vmatprep.subr.bf16.mxu1 %v1289_v21 }
 0x26d   :  { %1034 = vmatpush1.bf16.msra.mxu1 %v1299_v24 }
 0x26e   :  { %1052 = vmatprep.subr.bf16.mxu1 %v1235_v4 }
 0x333   :  { %v216_v49 = vpop.f32.mrb[0].mxu1 }
 0x334   :  { %v218_v50 = vpop.f32.mrb[1].mxu1  ;;  %v221_v54 = vadd.f32 %v934_v53, %v216_v49 }
 0x335   :  { %v222_v51 = vadd.f32 %v935_v48, %v218_v50 }
 0x336   :  { %v937_v55 = vmul.f32 -1.442695, %v221_v54 }
 0x337   :  { %1113 = vtanh.f32 %v222_v51  ;;  %v938_v1 = vmul.f32 -1.442695, %v222_v51 }
 0x338   :  { %1115 = vpow2.f32 %v937_v55 }
 0x341   :  { %v1114_v52 = vpop.eup %1113 }
 0x342   :  { %238 = vrot.lane.b32.xlu1 %v1114_v52, %s1198_s22  ;;  %v1116_v56 = vpop.eup %1115 }
 0x343   :  { %v229_v57 = vadd.f32 1.0, %v1116_v56 }
 0x345   :  { %1117 = vrcp.f32 %v229_v57 }
 0x34f   :  { %v1118_v58 = vpop.eup %1117 }
 0x350   :  { %v236_v61 = vmul.f32 %v1118_v58, %v137_v40 }
 0x3b4   :  { %v239_v59 = vpop.permute.xlu1 %238 }
 0x3b5   :  { %v241_v60 = vmul.f32 %v1118_v58, %v239_v59 }
 0x3b7   :  { %243 = vrot.lane.b32.xlu0 %v241_v60, %s1198_s22 }
 0x429   :  { %v244_v62 = vpop.permute.xlu0 %243 }
 0x42a   :  { %v246_v63 = vadd.f32 %v244_v62, %v236_v61  ;;  %v950_v61 = vld [vmem:[%s1451_s0 + $0x48] sm:$0xff] }
 0x42c   :  { %1119 = vtanh.f32 %v246_v63 }
 0x42d   :  { %1121 = vpow2.f32 %v938_v1 }
 0x436   :  { %v1120_v0 = vpop.eup %1119 }
 0x437   :  { %249 = vrot.lane.b32.xlu1 %v1120_v0, %s1198_s22  ;;  %v1122_v2 = vpop.eup %1121 }
 0x438   :  { %v230_v5 = vadd.f32 1.0, %v1122_v2  ;;  %v949_v2 = vld [vmem:[%s1451_s0 + $0x40] sm:$0xff] }
 0x43a   :  { %1123 = vrcp.f32 %v230_v5 }
 0x444   :  { %v1124_v6 = vpop.eup %1123 }
 0x4a9   :  { %v250_v7 = vpop.permute.xlu1 %249 }
 0x4aa   :  { %v252_v10 = vmul.f32 %v1124_v6, %v250_v7 }
 0x4ac   :  { %941 = vmatmul.mubr.msk.f32.vlgmr.msra.gmra.mrb[2].mxu0 %vm37_vm0, %v252_v10 }
 0x4ad   :  { %1038 = vmatpush1.bf16.msra.mxu0 %v1246_v8  ;;  %541 = vmatprep.mubr.f32.mxu0 %v1197_v3 }
 0x4ae   :  { %1040 = vmatprep.subr.bf16.mxu0 %v1248_v9 }
 0x4b1   :  { %1042 = vmatpush1.bf16.msra.mxu0 %v1265_v14 }
 0x4b2   :  { %1044 = vmatprep.subr.bf16.mxu0 %v1269_v15 }
 0x4b5   :  { %1046 = vmatpush1.bf16.msra.mxu0 %v1285_v20 }
 0x4b6   :  { %1048 = vmatprep.subr.bf16.mxu0 %v1289_v21 }
 0x4b9   :  { %1050 = vmatpush1.bf16.msra.mxu0 %v1299_v24 }
 0x4ba   :  { %1068 = vmatprep.subr.bf16.mxu0 %v1235_v4 }
 0x57f   :  { %v325_v12 = vpop.f32.mrb[2].mxu0 }
 0x580   :  { %v327_v13 = vpop.f32.mrb[3].mxu0  ;;  %v330_v19 = vadd.f32 %v939_v18, %v325_v12 }
 0x581   :  { %v331_v16 = vadd.f32 %v940_v11, %v327_v13 }
 0x582   :  { %v942_v22 = vmul.f32 -1.442695, %v330_v19 }
 0x583   :  { %1125 = vtanh.f32 %v331_v16  ;;  %v943_v33 = vmul.f32 -1.442695, %v331_v16 }
 0x584   :  { %1127 = vpow2.f32 %v942_v22 }
 0x58d   :  { %v1126_v17 = vpop.eup %1125 }
 0x58e   :  { %347 = vrot.lane.b32.xlu0 %v1126_v17, %s1198_s22  ;;  %v1128_v23 = vpop.eup %1127 }
 0x58f   :  { %v338_v25 = vadd.f32 1.0, %v1128_v23 }
 0x591   :  { %1129 = vrcp.f32 %v338_v25 }
 0x59b   :  { %v1130_v26 = vpop.eup %1129 }
 0x59c   :  { %v345_v29 = vmul.f32 %v1130_v26, %v246_v63 }
 0x600   :  { %v348_v27 = vpop.permute.xlu0 %347 }
 0x601   :  { %v350_v28 = vmul.f32 %v1130_v26, %v348_v27 }
 0x603   :  { %352 = vrot.lane.b32.xlu1 %v350_v28, %s1198_s22 }
 0x675   :  { %v353_v30 = vpop.permute.xlu1 %352 }
 0x676   :  { %v355_v31 = vadd.f32 %v353_v30, %v345_v29  ;;  %v955_v29 = vld [vmem:[%s1451_s0 + $0x58] sm:$0xff] }
 0x678   :  { %1131 = vtanh.f32 %v355_v31 }
 0x679   :  { %1133 = vpow2.f32 %v943_v33 }
 0x682   :  { %v1132_v32 = vpop.eup %1131 }
 0x683   :  { %358 = vrot.lane.b32.xlu0 %v1132_v32, %s1198_s22  ;;  %v1134_v34 = vpop.eup %1133 }
 0x684   :  { %v339_v35 = vadd.f32 1.0, %v1134_v34 }
 0x686   :  { %1135 = vrcp.f32 %v339_v35 }
 0x690   :  { %v1136_v36 = vpop.eup %1135 }
 0x6f5   :  { %v359_v37 = vpop.permute.xlu0 %358 }
 0x6f6   :  { %v361_v38 = vmul.f32 %v1136_v36, %v359_v37 }
 0x6f8   :  { %946 = vmatmul.mubr.msk.f32.vlgmr.msra.gmra.mrb[2].mxu1 %vm37_vm0, %v361_v38 }
 0x6f9   :  { %1054 = vmatpush1.bf16.msra.mxu1 %v1246_v8  ;;  %650 = vmatprep.mubr.f32.mxu1 %v1197_v3 }
 0x6fa   :  { %1056 = vmatprep.subr.bf16.mxu1 %v1248_v9 }
 0x6fd   :  { %1058 = vmatpush1.bf16.msra.mxu1 %v1265_v14 }
 0x6fe   :  { %1060 = vmatprep.subr.bf16.mxu1 %v1269_v15 }
 0x701   :  { %1062 = vmatpush1.bf16.msra.mxu1 %v1285_v20 }
 0x702   :  { %1064 = vmatprep.subr.bf16.mxu1 %v1289_v21 }
 0x705   :  { %1066 = vmatpush1.bf16.msra.mxu1 %v1299_v24 }
 0x706   :  { %1084 = vmatprep.subr.bf16.mxu1 %v1235_v4 }
 0x7cb   :  { %v434_v40 = vpop.f32.mrb[2].mxu1 }
 0x7cc   :  { %v436_v41 = vpop.f32.mrb[3].mxu1  ;;  %v439_v45 = vadd.f32 %v944_v44, %v434_v40  ;;  %v960_v44 = vld [vmem:[%s1451_s0 + $0x68] sm:$0xff] }
 0x7cd   :  { %v440_v42 = vadd.f32 %v945_v39, %v436_v41 }
 0x7ce   :  { %v947_v46 = vmul.f32 -1.442695, %v439_v45 }
 0x7cf   :  { %1137 = vtanh.f32 %v440_v42  ;;  %v948_v55 = vmul.f32 -1.442695, %v440_v42 }
 0x7d0   :  { %1139 = vpow2.f32 %v947_v46 }
 0x7d9   :  { %v1138_v43 = vpop.eup %1137 }
 0x7da   :  { %456 = vrot.lane.b32.xlu1 %v1138_v43, %s1198_s22  ;;  %v1140_v47 = vpop.eup %1139 }
 0x7db   :  { %v447_v4 = vadd.f32 1.0, %v1140_v47 }
 0x7dd   :  { %1141 = vrcp.f32 %v447_v4 }
 0x7e7   :  { %v1142_v48 = vpop.eup %1141 }
 0x7e8   :  { %v454_v51 = vmul.f32 %v1142_v48, %v355_v31 }
 0x84c   :  { %v457_v49 = vpop.permute.xlu1 %456 }
 0x84d   :  { %v459_v50 = vmul.f32 %v1142_v48, %v457_v49  ;;  %v959_v48 = vld [vmem:[%s1451_s0 + $0x60] sm:$0xff] }
 0x84f   :  { %461 = vrot.lane.b32.xlu0 %v459_v50, %s1198_s22 }
 0x8c1   :  { %v462_v52 = vpop.permute.xlu0 %461 }
 0x8c2   :  { %v464_v53 = vadd.f32 %v462_v52, %v454_v51 }
 0x8c4   :  { %1143 = vtanh.f32 %v464_v53 }
 0x8c5   :  { %1145 = vpow2.f32 %v948_v55 }
 0x8ce   :  { %v1144_v54 = vpop.eup %1143 }
 0x8cf   :  { %467 = vrot.lane.b32.xlu1 %v1144_v54, %s1198_s22  ;;  %v1146_v56 = vpop.eup %1145 }
 0x8d0   :  { %v448_v57 = vadd.f32 1.0, %v1146_v56 }
 0x8d2   :  { %1147 = vrcp.f32 %v448_v57 }
 0x8dc   :  { %v1148_v58 = vpop.eup %1147 }
 0x941   :  { %v468_v59 = vpop.permute.xlu1 %467 }
 0x942   :  { %v470_v60 = vmul.f32 %v1148_v58, %v468_v59 }
 0x944   :  { %951 = vmatmul.mubr.msk.f32.vlgmr.msra.gmra.mrb[4].mxu0 %vm37_vm0, %v470_v60 }
 0x945   :  { %1070 = vmatpush1.bf16.msra.mxu0 %v1246_v8  ;;  %759 = vmatprep.mubr.f32.mxu0 %v1197_v3 }
 0x946   :  { %1072 = vmatprep.subr.bf16.mxu0 %v1248_v9 }
 0x949   :  { %1074 = vmatpush1.bf16.msra.mxu0 %v1265_v14 }
 0x94a   :  { %1076 = vmatprep.subr.bf16.mxu0 %v1269_v15 }
 0x94d   :  { %1078 = vmatpush1.bf16.msra.mxu0 %v1285_v20 }
 0x94e   :  { %1080 = vmatprep.subr.bf16.mxu0 %v1289_v21 }
 0x951   :  { %1082 = vmatpush1.bf16.msra.mxu0 %v1299_v24 }
 0xa17   :  { %v543_v62 = vpop.f32.mrb[4].mxu0 }
 0xa18   :  { %v545_v63 = vpop.f32.mrb[5].mxu0  ;;  %v548_v5 = vadd.f32 %v949_v2, %v543_v62  ;;  %v965_v2 = vld [vmem:[%s1451_s0 + $0x78] sm:$0xff] }
 0xa19   :  { %v549_v0 = vadd.f32 %v950_v61, %v545_v63 }
 0xa1a   :  { %v952_v6 = vmul.f32 -1.442695, %v548_v5 }
 0xa1b   :  { %1149 = vtanh.f32 %v549_v0  ;;  %v953_v22 = vmul.f32 -1.442695, %v549_v0 }
 0xa1c   :  { %1151 = vpow2.f32 %v952_v6 }
 0xa25   :  { %v1150_v1 = vpop.eup %1149 }
 0xa26   :  { %565 = vrot.lane.b32.xlu0 %v1150_v1, %s1198_s22  ;;  %v1152_v7 = vpop.eup %1151 }
 0xa27   :  { %v556_v10 = vadd.f32 1.0, %v1152_v7 }
 0xa29   :  { %1153 = vrcp.f32 %v556_v10 }
 0xa33   :  { %v1154_v11 = vpop.eup %1153 }
 0xa34   :  { %v563_v16 = vmul.f32 %v1154_v11, %v464_v53 }
 0xa98   :  { %v566_v12 = vpop.permute.xlu0 %565 }
 0xa99   :  { %v568_v13 = vmul.f32 %v1154_v11, %v566_v12  ;;  %v964_v11 = vld [vmem:[%s1451_s0 + $0x70] sm:$0xff] }
 0xa9b   :  { %570 = vrot.lane.b32.xlu1 %v568_v13, %s1198_s22 }
 0xb0d   :  { %v571_v17 = vpop.permute.xlu1 %570 }
 0xb0e   :  { %v573_v18 = vadd.f32 %v571_v17, %v563_v16 }
 0xb10   :  { %1155 = vtanh.f32 %v573_v18 }
 0xb11   :  { %1157 = vpow2.f32 %v953_v22 }
 0xb1a   :  { %v1156_v19 = vpop.eup %1155 }
 0xb1b   :  { %576 = vrot.lane.b32.xlu0 %v1156_v19, %s1198_s22  ;;  %v1158_v23 = vpop.eup %1157 }
 0xb1c   :  { %v557_v25 = vadd.f32 1.0, %v1158_v23 }
 0xb1e   :  { %1159 = vrcp.f32 %v557_v25 }
 0xb28   :  { %v1160_v26 = vpop.eup %1159 }
 0xb8d   :  { %v577_v27 = vpop.permute.xlu0 %576 }
 0xb8e   :  { %v579_v28 = vmul.f32 %v1160_v26, %v577_v27  ;;  %v9_v27 = vstv %s1452_s3 }
 0xb8f   :  { %10 = vst [vmem:[#allocation2] sm:$0x1] %v9_v27 }
 0xb90   :  { %956 = vmatmul.mubr.msk.f32.vlgmr.msra.gmra.mrb[4].mxu1 %vm37_vm0, %v579_v28 }
 0xb91   :  { %1086 = vmatpush1.bf16.msra.mxu1 %v1246_v8  ;;  %868 = vmatprep.mubr.f32.mxu1 %v1197_v3 }
 0xb92   :  { %1088 = vmatprep.subr.bf16.mxu1 %v1248_v9  ;;  %v954_v9 = vld [vmem:[%s1451_s0 + $0x50] sm:$0xff] }
 0xb95   :  { %1090 = vmatpush1.bf16.msra.mxu1 %v1265_v14 }
 0xb96   :  { %1092 = vmatprep.subr.bf16.mxu1 %v1269_v15 }
 0xb99   :  { %1094 = vmatpush1.bf16.msra.mxu1 %v1285_v20 }
 0xb9a   :  { %1096 = vmatprep.subr.bf16.mxu1 %v1289_v21 }
 0xb9d   :  { %1098 = vmatpush1.bf16.msra.mxu1 %v1299_v24 }
 0xc63   :  { %v652_v30 = vpop.f32.mrb[4].mxu1 }
 0xc64   :  { %v654_v8 = vpop.f32.mrb[5].mxu1  ;;  %v657_v14 = vadd.f32 %v954_v9, %v652_v30  ;;  %v969_v9 = vld [vmem:[%s1453_s2] ss:$0 sm:$0xff] }
 0xc65   :  { %v658_v31 = vadd.f32 %v955_v29, %v654_v8 }
 0xc66   :  { %v957_v15 = vmul.f32 -1.442695, %v657_v14 }
 0xc67   :  { %1161 = vtanh.f32 %v658_v31  ;;  %v958_v38 = vmul.f32 -1.442695, %v658_v31 }
 0xc68   :  { %1163 = vpow2.f32 %v957_v15 }
 0xc71   :  { %v1162_v3 = vpop.eup %1161 }
 0xc72   :  { %674 = vrot.lane.b32.xlu1 %v1162_v3, %s1198_s22  ;;  %v1164_v20 = vpop.eup %1163 }
 0xc73   :  { %v665_v21 = vadd.f32 1.0, %v1164_v20 }
 0xc75   :  { %1165 = vrcp.f32 %v665_v21  ;;  %v970_v21 = vld [vmem:[#allocation2] ss:$0 sm:$0xff] }
 0xc7f   :  { %v1166_v24 = vpop.eup %1165 }
 0xc80   :  { %v672_v34 = vmul.f32 %v1166_v24, %v573_v18 }
 0xce4   :  { %v675_v32 = vpop.permute.xlu1 %674 }
 0xce5   :  { %v677_v33 = vmul.f32 %v1166_v24, %v675_v32 }
 0xce7   :  { %679 = vrot.lane.b32.xlu0 %v677_v33, %s1198_s22 }
 0xd59   :  { %v680_v35 = vpop.permute.xlu0 %679 }
 0xd5a   :  { %v682_v36 = vadd.f32 %v680_v35, %v672_v34 }
 0xd5c   :  { %1167 = vtanh.f32 %v682_v36 }
 0xd5d   :  { %1169 = vpow2.f32 %v958_v38 }
 0xd66   :  { %v1168_v37 = vpop.eup %1167 }
 0xd67   :  { %685 = vrot.lane.b32.xlu1 %v1168_v37, %s1198_s22  ;;  %v1170_v39 = vpop.eup %1169 }
 0xd68   :  { %v666_v40 = vadd.f32 1.0, %v1170_v39 }
 0xd6a   :  { %1171 = vrcp.f32 %v666_v40 }
 0xd74   :  { %v1172_v41 = vpop.eup %1171 }
 0xdd9   :  { %v686_v42 = vpop.permute.xlu1 %685 }
 0xdda   :  { %v688_v43 = vmul.f32 %v1172_v41, %v686_v42 }
 0xddc   :  { %961 = vmatmul.mubr.msk.f32.vlgmr.msra.gmra.mrb[6].mxu0 %vm37_vm0, %v688_v43 }
 0xeaf   :  { %v761_v45 = vpop.f32.mrb[6].mxu0 }
 0xeb0   :  { %v763_v46 = vpop.f32.mrb[7].mxu0  ;;  %v766_v49 = vadd.f32 %v959_v48, %v761_v45 }
 0xeb1   :  { %v767_v47 = vadd.f32 %v960_v44, %v763_v46 }
 0xeb2   :  { %v962_v50 = vmul.f32 -1.442695, %v766_v49 }
 0xeb3   :  { %1173 = vtanh.f32 %v767_v47  ;;  %v963_v60 = vmul.f32 -1.442695, %v767_v47 }
 0xeb4   :  { %1175 = vpow2.f32 %v962_v50 }
 0xebd   :  { %v1174_v4 = vpop.eup %1173 }
 0xebe   :  { %783 = vrot.lane.b32.xlu0 %v1174_v4, %s1198_s22  ;;  %v1176_v51 = vpop.eup %1175 }
 0xebf   :  { %v774_v52 = vadd.f32 1.0, %v1176_v51 }
 0xec1   :  { %1177 = vrcp.f32 %v774_v52 }
 0xecb   :  { %v1178_v53 = vpop.eup %1177 }
 0xecc   :  { %v781_v56 = vmul.f32 %v1178_v53, %v682_v36 }
 0xf30   :  { %v784_v54 = vpop.permute.xlu0 %783 }
 0xf31   :  { %v786_v55 = vmul.f32 %v1178_v53, %v784_v54 }
 0xf33   :  { %788 = vrot.lane.b32.xlu1 %v786_v55, %s1198_s22 }
 0xfa5   :  { %v789_v57 = vpop.permute.xlu1 %788 }
 0xfa6   :  { %v791_v58 = vadd.f32 %v789_v57, %v781_v56 }
 0xfa8   :  { %1179 = vtanh.f32 %v791_v58 }
 0xfa9   :  { %1181 = vpow2.f32 %v963_v60 }
 0xfb2   :  { %v1180_v59 = vpop.eup %1179 }
 0xfb3   :  { %794 = vrot.lane.b32.xlu0 %v1180_v59, %s1198_s22  ;;  %v1182_v61 = vpop.eup %1181 }
 0xfb4   :  { %v775_v62 = vadd.f32 1.0, %v1182_v61 }
 0xfb6   :  { %1183 = vrcp.f32 %v775_v62 }
 0xfc0   :  { %v1184_v63 = vpop.eup %1183 }
0x1025   :  { %v795_v0 = vpop.permute.xlu0 %794 }
0x1026   :  { %v797_v1 = vmul.f32 %v1184_v63, %v795_v0 }
0x1028   :  { %966 = vmatmul.mubr.msk.f32.vlgmr.msra.gmra.mrb[6].mxu1 %vm37_vm0, %v797_v1 }
0x10fb   :  { %v870_v5 = vpop.f32.mrb[6].mxu1 }
0x10fc   :  { %v872_v6 = vpop.f32.mrb[7].mxu1  ;;  %v875_v12 = vadd.f32 %v964_v11, %v870_v5 }
0x10fd   :  { %v876_v7 = vadd.f32 %v965_v2, %v872_v6 }
0x10fe   :  { %v967_v13 = vmul.f32 -1.442695, %v875_v12 }
0x10ff   :  { %1185 = vtanh.f32 %v876_v7  ;;  %v968_v29 = vmul.f32 -1.442695, %v876_v7 }
0x1100   :  { %1187 = vpow2.f32 %v967_v13 }
0x1109   :  { %v1186_v10 = vpop.eup %1185 }
0x110a   :  { %892 = vrot.lane.b32.xlu1 %v1186_v10, %s1198_s22  ;;  %v1188_v16 = vpop.eup %1187 }
0x110b   :  { %v883_v17 = vadd.f32 1.0, %v1188_v16 }
0x110d   :  { %1189 = vrcp.f32 %v883_v17 }
0x1117   :  { %v1190_v18 = vpop.eup %1189 }
0x1118   :  { %v890_v23 = vmul.f32 %v1190_v18, %v791_v58 }
0x117c   :  { %v893_v19 = vpop.permute.xlu1 %892 }
0x117d   :  { %v895_v22 = vmul.f32 %v1190_v18, %v893_v19 }
0x117f   :  { %897 = vrot.lane.b32.xlu0 %v895_v22, %s1198_s22 }
0x11f1   :  { %v898_v25 = vpop.permute.xlu0 %897 }
0x11f2   :  { %v900_v26 = vadd.f32 %v898_v25, %v890_v23 }
0x11f4   :  { %1191 = vtanh.f32 %v900_v26 }
0x11f5   :  { %1193 = vpow2.f32 %v968_v29 }
0x11fe   :  { %v1192_v28 = vpop.eup %1191 }
0x11ff   :  { %903 = vrot.lane.b32.xlu1 %v1192_v28, %s1198_s22  ;;  %v1194_v30 = vpop.eup %1193 }
0x1200   :  { %v884_v8 = vadd.f32 1.0, %v1194_v30 }
0x1202   :  { %1195 = vrcp.f32 %v884_v8 }
0x120c   :  { %v1196_v31 = vpop.eup %1195 }
0x1271   :  { %v904_v3 = vpop.permute.xlu1 %903 }
0x1272   :  { %v906_v14 = vmul.f32 %v1196_v31, %v904_v3 }
0x1274   :  { %v914_v15 = vmul.f32 %v969_v9, %v906_v14 }
0x1276   :  { %v915_v20 = vsel %vm37_vm0, %v914_v15, 0.0 }
0x1277   :  { %916 = vadd.xlane.f32.xlu0 %v915_v20 }
0x1304   :  { %v917_v24 = vpop.xlane.xlu0 %916 }
0x1305   :  { %v925_v32 = vadd.f32 %v970_v21, %v917_v24 }
0x1307   :  { %927 = vst.msk [vmem:[%s1454_s4] sm:$0xff] %vm926_vm1, %v925_v32 }

</bundles_post_ra>
